<compile_context>
chip_gen: v7x
topology: tpu7x:2x2x1
jax: 0.10.0
libtpu: 0.0.40
codegen_flags: <defaults>
</compile_context>

<pallas_src>
import jax
import jax.numpy as jnp
from jax.experimental import pallas as pl
from jax.experimental.pallas import tpu as pltpu

LN_EPS = 1e-5  # nn.LayerNorm default


def _round_up(x, m):
    return ((x + m - 1) // m) * m


def _bridgetower_kernel(patches_ref, w_ref, pos_ref, gamma_ref, beta_ref,
                        out_ref):
    # patches_ref : (B, TP, Kpad)    model dtype; seq row 0 (cls slot) is zeros
    # w_ref       : (Kpad, width)    model dtype -> MXU-native, f32 accumulate
    # pos_ref     : (TP, width)      f32; class embedding folded into row 0
    # gamma/beta  : (1, width)       f32
    # out_ref     : (TP, B*width)    output dtype; batch b lives in lane slice
    #                                [b*width : (b+1)*width]
    B = patches_ref.shape[0]
    width = w_ref.shape[1]
    inv_width = 1.0 / width

    # Hoist the small / shared loads out of the per-batch loop.
    w = w_ref[...]
    pos = pos_ref[...]
    gamma = gamma_ref[...]
    beta = beta_ref[...]

    for b in range(B):  # static unroll; image batches are small
        # conv1 (stride == kernel, no bias) == patch matmul on the MXU.
        emb = jnp.dot(patches_ref[b], w,
                      preferred_element_type=jnp.float32)      # (TP, width) f32
        tok = emb + pos                                         # pos already f32

        # One-pass LayerNorm statistics in f32 (fp16-safe LayerNorm subclass).
        s1 = jnp.sum(tok, axis=-1, keepdims=True)
        s2 = jnp.sum(tok * tok, axis=-1, keepdims=True)
        mean = s1 * inv_width
        var = jnp.maximum(s2 * inv_width - mean * mean, 0.0)
        y = (tok - mean) * jax.lax.rsqrt(var + LN_EPS)
        y = y * gamma + beta                                    # (TP, width) f32

        # Static, lane-aligned slice of the dense output slab (no transpose,
        # no sublane-masked stores when width % 128 == 0).
        out_ref[:, b * width:(b + 1) * width] = y.astype(out_ref.dtype)


def bridgetower_image_feature_extractor(x, conv_w, class_embedding,
                                        positional_embedding, ln_gamma,
                                        ln_beta, *, patch_size, seq_tile=None):
    """x: (B, C, H, W) NCHW.  Returns (seq, B, width) like the PyTorch module."""
    B, C, H, W_img = x.shape
    ps = patch_size
    assert H % ps == 0 and W_img % ps == 0
    gh, gw = H // ps, W_img // ps
    P = gh * gw
    seq = P + 1
    width = conv_w.shape[0]
    K = C * ps * ps
    assert positional_embedding.shape == (seq, width)

    Kpad = _round_up(K, 128)

    # im2col (layout glue, done once in the model dtype -> bf16 halves it):
    # (B,C,H,W) -> (B, P, K) with K in (c, kh, kw) order matching conv_w.
    patches = x.reshape(B, C, gh, ps, gw, ps)
    patches = patches.transpose(0, 2, 4, 1, 3, 5).reshape(B, P, K)
    # Prepend a zero row (class-token slot) and zero-pad K to a 128 multiple.
    patches = jnp.pad(patches, ((0, 0), (1, 0), (0, Kpad - K)))   # (B, seq, Kpad)

    # Conv weight (width, C, ps, ps) -> matmul matrix (Kpad, width), same dtype
    # as x so the MXU gets native (e.g. bf16) operands.
    w_mat = conv_w.reshape(width, K).T
    w_mat = jnp.pad(w_mat, ((0, Kpad - K), (0, 0))).astype(x.dtype)

    # Fold the class embedding into row 0 of the positional embedding and
    # pre-cast the small LN / pos params to f32 once (hoists per-step casts).
    pos_fused = positional_embedding.astype(jnp.float32).at[0].add(
        class_embedding.astype(jnp.float32))                     # (seq, width)
    gamma2 = ln_gamma.astype(jnp.float32).reshape(1, width)
    beta2 = ln_beta.astype(jnp.float32).reshape(1, width)

    # Sequence tile: full sequence when short (single aligned block), else 128
    # rows (multiple of 8) with a masked partial tail tile.
    if seq_tile is None:
        seq_tile = seq if seq <= 128 else 128
    TP = seq_tile
    n_tiles = pl.cdiv(seq, TP)

    out = pl.pallas_call(
        _bridgetower_kernel,
        # Lane-dense output slab: (seq, B*width); reshaped to (seq, B, width)
        # below as a free row-major view (no HBM transpose pass).
        out_shape=jax.ShapeDtypeStruct((seq, B * width), x.dtype),
        grid_spec=pltpu.PrefetchScalarGridSpec(
            num_scalar_prefetch=0,
            grid=(n_tiles,),
            in_specs=[
                pl.BlockSpec((B, TP, Kpad), lambda s: (0, s, 0)),
                pl.BlockSpec((Kpad, width), lambda s: (0, 0)),
                pl.BlockSpec((TP, width), lambda s: (s, 0)),
                pl.BlockSpec((1, width), lambda s: (0, 0)),
                pl.BlockSpec((1, width), lambda s: (0, 0)),
            ],
            out_specs=pl.BlockSpec((TP, B * width), lambda s: (s, 0)),
        ),
        compiler_params=pltpu.CompilerParams(
            dimension_semantics=("parallel",),
            vmem_limit_bytes=32 * 1024 * 1024),
    )(patches, w_mat, pos_fused, gamma2, beta2)

    return out.reshape(seq, B, width)  # free view; already (seq, B, width)


def _reference(x, conv_w, cls_emb, pos_emb, gamma, beta, patch_size):
    """Pure-JAX reference of the PyTorch forward (f32 inputs)."""
    B, C, H, W = x.shape
    ps = patch_size
    width = conv_w.shape[0]
    feat = jax.lax.conv_general_dilated(
        x, conv_w, window_strides=(ps, ps), padding="VALID",
        dimension_numbers=("NCHW", "OIHW", "NCHW"),
        precision=jax.lax.Precision.HIGHEST)                 # (B, width, gh, gw)
    feat = feat.reshape(B, width, -1).transpose(0, 2, 1)      # (B, P, width)
    t = jnp.broadcast_to(cls_emb.astype(x.dtype), (B, 1, width))
    tok = jnp.concatenate([t, feat], axis=1) + pos_emb.astype(x.dtype)
    tok32 = tok.astype(jnp.float32)
    mean = tok32.mean(-1, keepdims=True)
    var = ((tok32 - mean) ** 2).mean(-1, keepdims=True)
    ln = (tok32 - mean) * jax.lax.rsqrt(var + LN_EPS) * gamma + beta
    return ln.astype(x.dtype).transpose(1, 0, 2)


def _run_case(name, *, B, C, resolution, patch_size, width, dtype, atol, rtol):
    key = jax.random.PRNGKey(0)
    k_x, k_w, k_cls, k_pos, k_g, k_b = jax.random.split(key, 6)
    P = (resolution // patch_size) ** 2
    scale = width ** (-0.5)

    x = jax.random.normal(k_x, (B, C, resolution, resolution), jnp.float32)
    conv_w = jax.random.normal(
        k_w, (width, C, patch_size, patch_size), jnp.float32) * 0.02
    cls = scale * jax.random.normal(k_cls, (width,), jnp.float32)
    pos = scale * jax.random.normal(k_pos, (P + 1, width), jnp.float32)
    gamma = 1.0 + 0.1 * jax.random.normal(k_g, (width,), jnp.float32)
    beta = 0.1 * jax.random.normal(k_b, (width,), jnp.float32)

    out = bridgetower_image_feature_extractor(
        x.astype(dtype), conv_w.astype(dtype), cls, pos, gamma, beta,
        patch_size=patch_size)
    out = jax.block_until_ready(out)

    ref = _reference(x, conv_w, cls, pos, gamma, beta, patch_size)
    assert out.shape == (P + 1, B, width), (name, out.shape)
    out32 = out.astype(jnp.float32)
    ref32 = ref.astype(jnp.float32)
    assert jnp.allclose(out32, ref32, atol=atol, rtol=rtol), (
        name, float(jnp.max(jnp.abs(out32 - ref32))))


if __name__ == "__main__":
    # Small-shape tests consistent with the module structure (C=3 images).
    # 1) single seq tile, lane-unaligned width (masked-lane store path)
    _run_case("f32_small", B=2, C=3, resolution=16, patch_size=4, width=32,
              dtype=jnp.float32, atol=2e-4, rtol=2e-4)
    # 2) two sequence tiles (TP=128 + masked partial tail), aligned width
    _run_case("f32_two_tiles", B=2, C=3, resolution=48, patch_size=4,
              width=128, dtype=jnp.float32, atol=2e-4, rtol=2e-4)
    # 3) bf16 operands feed the MXU natively (loose tolerance vs f32 reference)
    _run_case("bf16_small", B=2, C=3, resolution=16, patch_size=4, width=128,
              dtype=jnp.bfloat16, atol=0.15, rtol=0.15)

    print("KERNEL_OK")
</pallas_src>

<mosaic_0001>
module attributes {stable_mosaic.version = 11 : i64} {
  func.func @_bridgetower_kernel(%arg0: i32, %arg1: memref<2x17x128xf32, #tpu.memory_space<vmem>>, %arg2: memref<128x32xf32, #tpu.memory_space<vmem>>, %arg3: memref<17x32xf32, #tpu.memory_space<vmem>>, %arg4: memref<1x32xf32, #tpu.memory_space<vmem>>, %arg5: memref<1x32xf32, #tpu.memory_space<vmem>>, %arg6: memref<17x64xf32, #tpu.memory_space<vmem>>) attributes {dimension_semantics = [#tpu.dimension_semantics<parallel>], iteration_bounds = array<i64: 1>, scalar_prefetch = 0 : i64, scratch_operands = 0 : i64, tpu.core_type = #tpu.core_type<tc>, window_params = [{transform_indices = @transform_0, window_bounds = array<i64: 2, 17, 128>}, {pipeline_mode = #tpu.pipeline_mode<synchronous>, transform_indices = @transform_1, window_bounds = array<i64: 128, 32>}, {transform_indices = @transform_2, window_bounds = array<i64: 17, 32>}, {pipeline_mode = #tpu.pipeline_mode<synchronous>, transform_indices = @transform_3, window_bounds = array<i64: 1, 32>}, {pipeline_mode = #tpu.pipeline_mode<synchronous>, transform_indices = @transform_4, window_bounds = array<i64: 1, 32>}, {transform_indices = @transform_5, window_bounds = array<i64: 17, 64>}]} {
    %c0 = arith.constant 0 : index
    %c0_0 = arith.constant 0 : index
    %0 = vector.load %arg2[%c0, %c0_0] : memref<128x32xf32, #tpu.memory_space<vmem>>, vector<128x32xf32>
    %c0_1 = arith.constant 0 : index
    %c0_2 = arith.constant 0 : index
    %1 = vector.load %arg3[%c0_1, %c0_2] : memref<17x32xf32, #tpu.memory_space<vmem>>, vector<17x32xf32>
    %c0_3 = arith.constant 0 : index
    %c0_4 = arith.constant 0 : index
    %2 = vector.load %arg4[%c0_3, %c0_4] : memref<1x32xf32, #tpu.memory_space<vmem>>, vector<1x32xf32>
    %c0_5 = arith.constant 0 : index
    %c0_6 = arith.constant 0 : index
    %3 = vector.load %arg5[%c0_5, %c0_6] : memref<1x32xf32, #tpu.memory_space<vmem>>, vector<1x32xf32>
    %c0_7 = arith.constant 0 : index
    %c0_8 = arith.constant 0 : index
    %c0_9 = arith.constant 0 : index
    %4 = vector.load %arg1[%c0_7, %c0_8, %c0_9] : memref<2x17x128xf32, #tpu.memory_space<vmem>>, vector<1x17x128xf32>
    %5 = vector.shape_cast %4 : vector<1x17x128xf32> to vector<17x128xf32>
    %cst = arith.constant dense<0.000000e+00> : vector<17x32xf32>
    %6 = tpu.matmul %5, %0, %cst {dimension_numbers = #tpu.dot_dimension_numbers<[1], [0], [0], [1], [0, 0, 1, 1], [], []>} : vector<17x128xf32>, vector<128x32xf32>, vector<17x32xf32> -> vector<17x32xf32>
    %7 = arith.addf %6, %1 : vector<17x32xf32>
    %cst_10 = arith.constant dense<0.000000e+00> : vector<17xf32>
    %8 = vector.multi_reduction <add>, %7, %cst_10 [1] : vector<17x32xf32> to vector<17xf32>
    %9 = vector.shape_cast %8 : vector<17xf32> to vector<17x1xf32>
    %10 = arith.mulf %7, %7 : vector<17x32xf32>
    %cst_11 = arith.constant dense<0.000000e+00> : vector<17xf32>
    %11 = vector.multi_reduction <add>, %10, %cst_11 [1] : vector<17x32xf32> to vector<17xf32>
    %12 = vector.shape_cast %11 : vector<17xf32> to vector<17x1xf32>
    %cst_12 = arith.constant 3.125000e-02 : f32
    %13 = vector.broadcast %cst_12 : f32 to vector<17x1xf32>
    %14 = arith.mulf %9, %13 : vector<17x1xf32>
    %cst_13 = arith.constant 3.125000e-02 : f32
    %15 = vector.broadcast %cst_13 : f32 to vector<17x1xf32>
    %16 = arith.mulf %12, %15 : vector<17x1xf32>
    %17 = arith.mulf %14, %14 : vector<17x1xf32>
    %18 = arith.subf %16, %17 : vector<17x1xf32>
    %cst_14 = arith.constant 0.000000e+00 : f32
    %19 = vector.broadcast %cst_14 : f32 to vector<17x1xf32>
    %20 = arith.maximumf %18, %19 : vector<17x1xf32>
    %21 = vector.broadcast %14 : vector<17x1xf32> to vector<17x32xf32>
    %22 = arith.subf %7, %21 : vector<17x32xf32>
    %cst_15 = arith.constant 9.99999974E-6 : f32
    %23 = vector.broadcast %cst_15 : f32 to vector<17x1xf32>
    %24 = arith.addf %20, %23 : vector<17x1xf32>
    %25 = math.rsqrt %24 : vector<17x1xf32>
    %26 = vector.broadcast %25 : vector<17x1xf32> to vector<17x32xf32>
    %27 = arith.mulf %22, %26 : vector<17x32xf32>
    %28 = vector.broadcast %2 : vector<1x32xf32> to vector<17x32xf32>
    %29 = arith.mulf %27, %28 : vector<17x32xf32>
    %30 = vector.broadcast %3 : vector<1x32xf32> to vector<17x32xf32>
    %31 = arith.addf %29, %30 : vector<17x32xf32>
    %c0_16 = arith.constant 0 : index
    %c0_17 = arith.constant 0 : index
    %32 = vector.load %arg6[%c0_16, %c0_17] : memref<17x64xf32, #tpu.memory_space<vmem>>, vector<17x32xf32>
    tpu.vector_store %arg6[%c0_16, %c0_17], %31 {strides = array<i32>} : memref<17x64xf32, #tpu.memory_space<vmem>>, vector<17x32xf32>,
    %c1 = arith.constant 1 : index
    %c0_18 = arith.constant 0 : index
    %c0_19 = arith.constant 0 : index
    %33 = vector.load %arg1[%c1, %c0_18, %c0_19] : memref<2x17x128xf32, #tpu.memory_space<vmem>>, vector<1x17x128xf32>
    %34 = vector.shape_cast %33 : vector<1x17x128xf32> to vector<17x128xf32>
    %cst_20 = arith.constant dense<0.000000e+00> : vector<17x32xf32>
    %35 = tpu.matmul %34, %0, %cst_20 {dimension_numbers = #tpu.dot_dimension_numbers<[1], [0], [0], [1], [0, 0, 1, 1], [], []>} : vector<17x128xf32>, vector<128x32xf32>, vector<17x32xf32> -> vector<17x32xf32>
    %36 = arith.addf %35, %1 : vector<17x32xf32>
    %cst_21 = arith.constant dense<0.000000e+00> : vector<17xf32>
    %37 = vector.multi_reduction <add>, %36, %cst_21 [1] : vector<17x32xf32> to vector<17xf32>
    %38 = vector.shape_cast %37 : vector<17xf32> to vector<17x1xf32>
    %39 = arith.mulf %36, %36 : vector<17x32xf32>
    %cst_22 = arith.constant dense<0.000000e+00> : vector<17xf32>
    %40 = vector.multi_reduction <add>, %39, %cst_22 [1] : vector<17x32xf32> to vector<17xf32>
    %41 = vector.shape_cast %40 : vector<17xf32> to vector<17x1xf32>
    %cst_23 = arith.constant 3.125000e-02 : f32
    %42 = vector.broadcast %cst_23 : f32 to vector<17x1xf32>
    %43 = arith.mulf %38, %42 : vector<17x1xf32>
    %cst_24 = arith.constant 3.125000e-02 : f32
    %44 = vector.broadcast %cst_24 : f32 to vector<17x1xf32>
    %45 = arith.mulf %41, %44 : vector<17x1xf32>
    %46 = arith.mulf %43, %43 : vector<17x1xf32>
    %47 = arith.subf %45, %46 : vector<17x1xf32>
    %cst_25 = arith.constant 0.000000e+00 : f32
    %48 = vector.broadcast %cst_25 : f32 to vector<17x1xf32>
    %49 = arith.maximumf %47, %48 : vector<17x1xf32>
    %50 = vector.broadcast %43 : vector<17x1xf32> to vector<17x32xf32>
    %51 = arith.subf %36, %50 : vector<17x32xf32>
    %cst_26 = arith.constant 9.99999974E-6 : f32
    %52 = vector.broadcast %cst_26 : f32 to vector<17x1xf32>
    %53 = arith.addf %49, %52 : vector<17x1xf32>
    %54 = math.rsqrt %53 : vector<17x1xf32>
    %55 = vector.broadcast %54 : vector<17x1xf32> to vector<17x32xf32>
    %56 = arith.mulf %51, %55 : vector<17x32xf32>
    %57 = vector.broadcast %2 : vector<1x32xf32> to vector<17x32xf32>
    %58 = arith.mulf %56, %57 : vector<17x32xf32>
    %59 = vector.broadcast %3 : vector<1x32xf32> to vector<17x32xf32>
    %60 = arith.addf %58, %59 : vector<17x32xf32>
    %c0_27 = arith.constant 0 : index
    %c32 = arith.constant 32 : index
    %61 = vector.load %arg6[%c0_27, %c32] : memref<17x64xf32, #tpu.memory_space<vmem>>, vector<17x32xf32>
    tpu.vector_store %arg6[%c0_27, %c32], %60 {strides = array<i32>} : memref<17x64xf32, #tpu.memory_space<vmem>>, vector<17x32xf32>,
    return
  }
  func.func @transform_0(%arg0: i32) -> (i32, i32, i32) {
    %c0_i32 = arith.constant 0 : i32
    %c0_i32_0 = arith.constant 0 : i32
    %c0_i32_1 = arith.constant 0 : i32
    return %c0_i32, %arg0, %c0_i32_0 : i32, i32, i32
  }
  func.func @transform_1(%arg0: i32) -> (i32, i32) {
    %c0_i32 = arith.constant 0 : i32
    %c0_i32_0 = arith.constant 0 : i32
    %c0_i32_1 = arith.constant 0 : i32
    return %c0_i32, %c0_i32_0 : i32, i32
  }
  func.func @transform_2(%arg0: i32) -> (i32, i32) {
    %c0_i32 = arith.constant 0 : i32
    %c0_i32_0 = arith.constant 0 : i32
    return %arg0, %c0_i32 : i32, i32
  }
  func.func @transform_3(%arg0: i32) -> (i32, i32) {
    %c0_i32 = arith.constant 0 : i32
    %c0_i32_0 = arith.constant 0 : i32
    %c0_i32_1 = arith.constant 0 : i32
    return %c0_i32, %c0_i32_0 : i32, i32
  }
  func.func @transform_4(%arg0: i32) -> (i32, i32) {
    %c0_i32 = arith.constant 0 : i32
    %c0_i32_0 = arith.constant 0 : i32
    %c0_i32_1 = arith.constant 0 : i32
    return %c0_i32, %c0_i32_0 : i32, i32
  }
  func.func @transform_5(%arg0: i32) -> (i32, i32) {
    %c0_i32 = arith.constant 0 : i32
    %c0_i32_0 = arith.constant 0 : i32
    return %arg0, %c0_i32 : i32, i32
  }
}

</mosaic_0001>

<bundles_post_ra>
// kernel: tpu_custom_call.1
= control target key start
LH: loop header
LB: loop body
LE: loop exit
PB: predicated region body
PF: predicated region fallthrough
CT: control target
= control target key end

     0   :  { %v583_v3 = vmov 0.0|0.0   ;;  %vm584_vm0 = vmmov 0   ;;  %v585_v6 = vmov 0.0   ;;  %s776_s0 = inlined_call_operand.vmem [shape: f32[2,17,128], index: 0, kind: input, shape index: {}]   ;;  %s777_s1 = inlined_call_operand.vmem [shape: f32[128,32], index: 1, kind: input, shape index: {}]   ;;  %s778_s2 = inlined_call_operand.vmem [shape: f32[17,32], index: 2, kind: input, shape index: {}]   ;;  %s779_s3 = inlined_call_operand.vmem [shape: f32[1,32], index: 3, kind: input, shape index: {}]   ;;  %s780_s4 = inlined_call_operand.vmem [shape: f32[1,32], index: 4, kind: input, shape index: {}]   ;;  %s781_s5 = inlined_call_operand.hbm [shape: f32[17,64], index: 5, kind: output, shape index: {}]  }
   0x1   :  { %v21_v0 = vld [vmem:[%s777_s1] sm:$0xff]  ;;  %v22_v1 = vld [vmem:[%s777_s1 + $0x8] sm:$0xff]  ;;  %v23_v2 = vld [vmem:[%s777_s1 + $0x10] sm:$0xff]  ;;  %516 = vmatprep.subr.bf16.mxu1 %v583_v3  ;;  %492 = vmatprep.subr.bf16.mxu0 %v583_v3 }
   0x2   :  { %v493_v4 = vpack.c.bf16 %v22_v1, %v21_v0  ;;  %v24_v5 = vld [vmem:[%s777_s1 + $0x18] sm:$0xff]  ;;  %483 = vmatprep.mubr.msk.f32.mxu1 %vm584_vm0, %v585_v6  ;;  %442 = vmatprep.mubr.msk.f32.mxu0 %vm584_vm0, %v585_v6  ;;  %v25_v8 = vld [vmem:[%s777_s1 + $0x20] sm:$0xff]  ;;  %v26_v9 = vld [vmem:[%s777_s1 + $0x28] sm:$0xff] }
   0x3   :  { %v496_v7 = vpack.c.bf16 %v24_v5, %v23_v2  ;;  %v499_v10 = vpack.c.bf16 %v26_v9, %v25_v8 }
   0x4   :  { %518 = vmatpush3.bf16.msra.mxu1 %v493_v4  ;;  %494 = vmatpush3.bf16.msra.mxu0 %v493_v4 }
   0x5   :  { %519 = vmatprep.subr.bf16.mxu1 %v583_v3  ;;  %495 = vmatprep.subr.bf16.mxu0 %v583_v3 }
   0x8   :  { %521 = vmatpush3.bf16.msra.mxu1 %v496_v7  ;;  %497 = vmatpush3.bf16.msra.mxu0 %v496_v7 }
   0x9   :  { %10 = vsyncpa [#allocation3], 0  ;;  %522 = vmatprep.subr.bf16.mxu1 %v583_v3  ;;  %v27_v11 = vld [vmem:[%s777_s1 + $0x30] sm:$0xff]  ;;  %v28_v12 = vld [vmem:[%s777_s1 + $0x38] sm:$0xff]  ;;  %498 = vmatprep.subr.bf16.mxu0 %v583_v3  ;;  %vm125_vm1 = vcmask 261120   ;;  %vm132_vm2 = vcmask 253952  }
   0xa   :  { %v502_v13 = vpack.c.bf16 %v28_v12, %v27_v11  ;;  %v29_v14 = vld [vmem:[%s777_s1 + $0x40] sm:$0xff]  ;;  %v30_v15 = vld [vmem:[%s777_s1 + $0x48] sm:$0xff]  ;;  %v31_v17 = vld [vmem:[%s777_s1 + $0x50] sm:$0xff]  ;;  %vm346_vm3 = vcmask 523520   ;;  %vm349_vm4 = vcmask 516352  }
   0xb   :  { %v505_v16 = vpack.c.bf16 %v30_v15, %v29_v14  ;;  %v32_v18 = vld [vmem:[%s777_s1 + $0x58] sm:$0xff]  ;;  %v33_v20 = vld [vmem:[%s777_s1 + $0x60] sm:$0xff]  ;;  %v34_v21 = vld [vmem:[%s777_s1 + $0x68] sm:$0xff] }
   0xc   :  { %524 = vmatpush3.bf16.msra.mxu1 %v499_v10  ;;  %500 = vmatpush3.bf16.msra.mxu0 %v499_v10  ;;  %v508_v19 = vpack.c.bf16 %v32_v18, %v31_v17  ;;  %v511_v22 = vpack.c.bf16 %v34_v21, %v33_v20  ;;  %v35_v23 = vld [vmem:[%s777_s1 + $0x70] sm:$0xff]  ;;  %v36_v24 = vld [vmem:[%s777_s1 + $0x78] sm:$0xff]  ;;  %v42_v27 = vld [vmem:[%s776_s0] sm:$0xff] }
   0xd   :  { %525 = vmatprep.subr.bf16.mxu1 %v583_v3  ;;  %501 = vmatprep.subr.bf16.mxu0 %v583_v3  ;;  %v514_v25 = vpack.c.bf16 %v36_v24, %v35_v23  ;;  %v369_v26 = vld [vmem:[%s776_s0 + $0x18] sm:$0xff]  ;;  %v370_v28 = vld [vmem:[%s776_s0 + $0x20] sm:$0xff]  ;;  %v43_v29 = vld [vmem:[%s776_s0 + $0x8] sm:$0xff] }
   0xe   :  { %v371_v30 = vld [vmem:[%s776_s0 + $0x28] sm:$0x1]  ;;  %v44_v31 = vld [vmem:[%s776_s0 + $0x10] sm:$0x1]  ;;  %v37_v32 = vld [vmem:[%s778_s2] sm:$0xff] }
   0xf   :  { %v38_v38 = vld [vmem:[%s778_s2 + $0x8] sm:$0xff]  ;;  %v39_v47 = vld [vmem:[%s778_s2 + $0x10] sm:$0x1] }
  0x10   :  { %527 = vmatpush3.bf16.msra.mxu1 %v502_v13  ;;  %503 = vmatpush3.bf16.msra.mxu0 %v502_v13 }
  0x11   :  { %528 = vmatprep.subr.bf16.mxu1 %v583_v3  ;;  %504 = vmatprep.subr.bf16.mxu0 %v583_v3 }
  0x14   :  { %530 = vmatpush3.bf16.msra.mxu1 %v505_v16  ;;  %506 = vmatpush3.bf16.msra.mxu0 %v505_v16 }
  0x15   :  { %531 = vmatprep.subr.bf16.mxu1 %v583_v3  ;;  %507 = vmatprep.subr.bf16.mxu0 %v583_v3 }
  0x18   :  { %533 = vmatpush3.bf16.msra.mxu1 %v508_v19  ;;  %509 = vmatpush3.bf16.msra.mxu0 %v508_v19 }
  0x19   :  { %534 = vmatprep.subr.bf16.mxu1 %v583_v3  ;;  %510 = vmatprep.subr.bf16.mxu0 %v583_v3 }
  0x1c   :  { %536 = vmatpush3.bf16.msra.mxu1 %v511_v22  ;;  %512 = vmatpush3.bf16.msra.mxu0 %v511_v22 }
  0x1d   :  { %537 = vmatprep.subr.bf16.mxu1 %v583_v3  ;;  %513 = vmatprep.subr.bf16.mxu0 %v583_v3 }
  0x20   :  { %539 = vmatpush3.bf16.msra.mxu1 %v514_v25  ;;  %515 = vmatpush3.bf16.msra.mxu0 %v514_v25 }
  0x23   :  { %484 = vmatmul.mubr.f32.vlgmr.msra.gmra.mrb[0].mxu1 %v369_v26  ;;  %443 = vmatmul.mubr.f32.vlgmr.msra.gmra.mrb[0].mxu0 %v42_v27 }
  0x24   :  { %486 = vmatprep.mubr.msk.f32.mxu1 %vm584_vm0, %v585_v6  ;;  %445 = vmatprep.mubr.msk.f32.mxu0 %vm584_vm0, %v585_v6 }
  0x27   :  { %487 = vmatmul.mubr.f32.gmra.mrb[2].mxu1 %v370_v28  ;;  %446 = vmatmul.mubr.f32.gmra.mrb[2].mxu0 %v43_v29 }
  0x28   :  { %489 = vmatprep.mubr.msk.f32.mxu1 %vm584_vm0, %v585_v6  ;;  %448 = vmatprep.mubr.msk.f32.mxu0 %vm584_vm0, %v585_v6 }
  0x2b   :  { %490 = vmatmul.mubr.f32.gmra.mrb[4].mxu1 %v371_v30  ;;  %449 = vmatmul.mubr.f32.gmra.mrb[4].mxu0 %v44_v31 }
  0xf6   :  { %v266_v33 = vpop.f32.mrb[0].mxu1  ;;  %v111_v34 = vpop.f32.mrb[0].mxu0 }
  0xf7   :  { %v701_v35 = vadd.f32 %v266_v33, %v37_v32  ;;  %v485_v36 = vpop.f32.mrb[1].mxu1  ;;  %v444_v37 = vpop.f32.mrb[1].mxu0  ;;  %v722_v54 = vadd.f32 %v111_v34, %v37_v32 }
  0xf9   :  { %v280_v39 = vsel %vm125_vm1, %v701_v35, 0.0  ;;  %v289_v40 = vmul.f32 %v701_v35, %v701_v35  ;;  %v126_v60 = vsel %vm125_vm1, %v722_v54, 0.0  ;;  %v136_v1 = vmul.f32 %v722_v54, %v722_v54 }
  0xfa   :  { %281 = vadd.xlane.f32.xlu0 %v280_v39  ;;  %v271_v41 = vpop.f32.mrb[2].mxu1  ;;  %v116_v42 = vpop.f32.mrb[2].mxu0 }
  0xfb   :  { %v710_v43 = vadd.f32 %v271_v41, %v38_v38  ;;  %v488_v44 = vpop.f32.mrb[3].mxu1  ;;  %v292_v45 = vsel %vm125_vm1, %v289_v40, 0.0  ;;  %v447_v46 = vpop.f32.mrb[3].mxu0  ;;  %v729_v59 = vadd.f32 %v116_v42, %v38_v38  ;;  %v139_v3 = vsel %vm125_vm1, %v136_v1, 0.0 }
  0xfc   :  { %293 = vadd.xlane.f32.xlu1 %v292_v45 }
  0xfd   :  { %v283_v48 = vsel %vm125_vm1, %v710_v43, 0.0  ;;  %v290_v49 = vmul.f32 %v710_v43, %v710_v43  ;;  %v129_v63 = vsel %vm125_vm1, %v729_v59, 0.0  ;;  %v137_v2 = vmul.f32 %v729_v59, %v729_v59 }
  0xfe   :  { %284 = vadd.xlane.f32.xlu0 %v283_v48  ;;  %v276_v50 = vpop.f32.mrb[4].mxu1  ;;  %v121_v51 = vpop.f32.mrb[4].mxu0 }
  0xff   :  { %v720_v52 = vadd.f32 %v276_v50, %v39_v47  ;;  %v491_v53 = vpop.f32.mrb[5].mxu1  ;;  %v450_v55 = vpop.f32.mrb[5].mxu0  ;;  %v295_v56 = vsel %vm125_vm1, %v290_v49, 0.0  ;;  %v733_v61 = vadd.f32 %v121_v51, %v39_v47  ;;  %v142_v4 = vsel %vm125_vm1, %v137_v2, 0.0  ;;  %v367_v47 = vld [vmem:[%s779_s3] ss:$0 sm:$0xff] }
 0x100   :  { %v368_v53 = vld [vmem:[%s780_s4] ss:$0 sm:$0xff]  ;;  %s586_s3 = smov 32   ;;  %s587_s4 = smov [#allocation2]  }
 0x101   :  { %v286_v57 = vsel %vm132_vm2, %v720_v52, 0.0  ;;  %v291_v58 = vmul.f32 %v720_v52, %v720_v52  ;;  %v133_v0 = vsel %vm132_vm2, %v733_v61, 0.0  ;;  %v138_v5 = vmul.f32 %v733_v61, %v733_v61  ;;  %s356_s19 = sshll.u32 %s587_s4, 4  ;;  %s357_s19 = int_to_ptr.vmem [resolvable:$true] %s356_s19 }
 0x102   :  { %296 = vadd.xlane.f32.xlu0 %v295_v56  ;;  %287 = vadd.xlane.f32.xlu1 %v286_v57  ;;  %s559_s20 = scalar_lea.vmem %s357_s19, 384  ;;  %p564_p1 = scmp.lt.s32.totalorder %s357_s19, %s357_s19 }
 0x103   :  { %v298_v62 = vsel %vm132_vm2, %v291_v58, 0.0  ;;  %v145_v6 = vsel %vm132_vm2, %v138_v5, 0.0  ;;  %p560_p0 = scmp.ne.s32.totalorder %s357_s19, %s559_s20  ;;  %p565_p2 = scmp.lt.s32.totalorder %s559_s20, %s559_s20 }
 0x105   :  { %p566_p3 = por %p565_p2, %p564_p1 }
 0x106   :  { %299 = vadd.xlane.f32.xlu1 %v298_v62  ;;  %127 = vadd.xlane.f32.xlu0 %v126_v60 }
 0x107   :  { %p567_p4 = pnand %p566_p3, %p560_p0 }
 0x10a   :  { %130 = vadd.xlane.f32.xlu1 %v129_v63  ;;  %134 = vadd.xlane.f32.xlu0 %v133_v0 }
 0x10e   :  { %140 = vadd.xlane.f32.xlu1 %v139_v3  ;;  %143 = vadd.xlane.f32.xlu0 %v142_v4 }
 0x112   :  { %146 = vadd.xlane.f32.xlu1 %v145_v6 }
 0x187   :  { %v282_v7 = vpop.xlane.xlu0 %281 }
 0x188   :  { %v301_v8 = vmul.f32 0.03125, %v282_v7 }
 0x189   :  { %v294_v9 = vpop.xlane.xlu1 %293 }
 0x18a   :  { %v307_v10 = vmul.f32 %v301_v8, %v301_v8  ;;  %v304_v11 = vmul.f32 0.03125, %v294_v9  ;;  %v316_v39 = vsub.f32 %v701_v35, %v301_v8 }
 0x18b   :  { %v285_v12 = vpop.xlane.xlu0 %284 }
 0x18c   :  { %v310_v13 = vsub.f32 %v304_v11, %v307_v10  ;;  %v302_v14 = vmul.f32 0.03125, %v285_v12 }
 0x18e   :  { %v313_v15 = vmax.f32 %v310_v13, 0.0  ;;  %v308_v19 = vmul.f32 %v302_v14, %v302_v14  ;;  %v317_v60 = vsub.f32 %v710_v43, %v302_v14 }
 0x18f   :  { %v297_v16 = vpop.xlane.xlu0 %296  ;;  %v288_v17 = vpop.xlane.xlu1 %287 }
 0x190   :  { %v319_v18 = vadd.f32 1e-05, %v313_v15  ;;  %v305_v20 = vmul.f32 0.03125, %v297_v16  ;;  %v303_v21 = vmul.f32 0.03125, %v288_v17 }
 0x192   :  { %547 = vrsqrt.f32 %v319_v18  ;;  %v311_v22 = vsub.f32 %v305_v20, %v308_v19  ;;  %v309_v26 = vmul.f32 %v303_v21, %v303_v21  ;;  %v318_v5 = vsub.f32 %v720_v52, %v303_v21 }
 0x193   :  { %v300_v23 = vpop.xlane.xlu1 %299  ;;  %v128_v24 = vpop.xlane.xlu0 %127 }
 0x194   :  { %v314_v25 = vmax.f32 %v311_v22, 0.0  ;;  %v306_v27 = vmul.f32 0.03125, %v300_v23  ;;  %v148_v33 = vmul.f32 0.03125, %v128_v24 }
 0x196   :  { %v320_v28 = vadd.f32 1e-05, %v314_v25  ;;  %v312_v29 = vsub.f32 %v306_v27, %v309_v26  ;;  %v154_v37 = vmul.f32 %v148_v33, %v148_v33  ;;  %v163_v12 = vsub.f32 %v722_v54, %v148_v33 }
 0x197   :  { %v131_v30 = vpop.xlane.xlu1 %130  ;;  %v135_v31 = vpop.xlane.xlu0 %134 }
 0x198   :  { %549 = vrsqrt.f32 %v320_v28  ;;  %v315_v32 = vmax.f32 %v312_v29, 0.0  ;;  %v149_v34 = vmul.f32 0.03125, %v131_v30  ;;  %v150_v44 = vmul.f32 0.03125, %v135_v31 }
 0x19a   :  { %v321_v36 = vadd.f32 1e-05, %v315_v32  ;;  %v155_v38 = vmul.f32 %v149_v34, %v149_v34  ;;  %v156_v49 = vmul.f32 %v150_v44, %v150_v44  ;;  %v164_v14 = vsub.f32 %v729_v59, %v149_v34 }
 0x19b   :  { %v141_v40 = vpop.xlane.xlu1 %140  ;;  %v144_v41 = vpop.xlane.xlu0 %143  ;;  %v165_v52 = vsub.f32 %v733_v61, %v150_v44 }
 0x19c   :  { %v548_v42 = vpop.eup %547  ;;  %551 = vrsqrt.f32 %v321_v36  ;;  %v151_v45 = vmul.f32 0.03125, %v141_v40  ;;  %v152_v46 = vmul.f32 0.03125, %v144_v41 }
 0x19d   :  { %v325_v48 = vmul.f32 %v548_v42, %v316_v39 }
 0x19e   :  { %v157_v50 = vsub.f32 %v151_v45, %v154_v37  ;;  %v158_v51 = vsub.f32 %v152_v46, %v155_v38 }
 0x19f   :  { %v147_v35 = vpop.xlane.xlu1 %146  ;;  %v328_v55 = vmul.f32 %v367_v47, %v325_v48 }
 0x1a0   :  { %v160_v56 = vmax.f32 %v157_v50, 0.0  ;;  %v161_v57 = vmax.f32 %v158_v51, 0.0  ;;  %v153_v58 = vmul.f32 0.03125, %v147_v35 }
 0x1a1   :  { %v331_v62 = vadd.f32 %v368_v53, %v328_v55 }
 0x1a2   :  { %v550_v63 = vpop.eup %549  ;;  %v166_v0 = vadd.f32 1e-05, %v160_v56  ;;  %v167_v1 = vadd.f32 1e-05, %v161_v57  ;;  %v159_v2 = vsub.f32 %v153_v58, %v156_v49 }
 0x1a3   :  { %337 = vrot.lane.b32.xlu0 %v331_v62, %s586_s3  ;;  %v326_v3 = vmul.f32 %v550_v63, %v317_v60 }
 0x1a4   :  { %553 = vrsqrt.f32 %v166_v0  ;;  %v162_v4 = vmax.f32 %v159_v2, 0.0 }
 0x1a5   :  { %555 = vrsqrt.f32 %v167_v1  ;;  %v329_v6 = vmul.f32 %v367_v47, %v326_v3 }
 0x1a6   :  { %v552_v7 = vpop.eup %551  ;;  %v168_v8 = vadd.f32 1e-05, %v162_v4 }
 0x1a7   :  { %v332_v9 = vadd.f32 %v368_v53, %v329_v6  ;;  %v327_v10 = vmul.f32 %v552_v7, %v318_v5 }
 0x1a8   :  { %557 = vrsqrt.f32 %v168_v8 }
 0x1a9   :  { %339 = vrot.lane.b32.xlu1 %v332_v9, %s586_s3  ;;  %v330_v43 = vmul.f32 %v367_v47, %v327_v10 }
 0x1ab   :  { %v333_v11 = vadd.f32 %v368_v53, %v330_v43 }
 0x1ad   :  { %341 = vrot.lane.b32.xlu1 %v333_v11, %s586_s3 }
 0x1ae   :  { %v554_v13 = vpop.eup %553 }
 0x1af   :  { %v556_v15 = vpop.eup %555  ;;  %v172_v16 = vmul.f32 %v554_v13, %v163_v12 }
 0x1b0   :  { %v173_v17 = vmul.f32 %v556_v15, %v164_v14 }
 0x1b1   :  { %v181_v18 = vmul.f32 %v367_v47, %v172_v16 }
 0x1b2   :  { %v558_v19 = vpop.eup %557  ;;  %v182_v20 = vmul.f32 %v367_v47, %v173_v17 }
 0x1b3   :  { %v190_v21 = vadd.f32 %v368_v53, %v181_v18  ;;  %v174_v22 = vmul.f32 %v558_v19, %v165_v52 }
 0x1b4   :  { %v191_v23 = vadd.f32 %v368_v53, %v182_v20 }
 0x1b5   :  { %193 = vst.msk [vmem:[#allocation2] sm:$0xff] %vm125_vm1, %v190_v21  ;;  %v183_v24 = vmul.f32 %v367_v47, %v174_v22 }
 0x1b6   :  { %194 = vst.msk [vmem:[#allocation2 + $0x8] sm:$0xff] %vm125_vm1, %v191_v23 }
 0x1b7   :  { %v192_v54 = vadd.f32 %v368_v53, %v183_v24 }
 0x1b9   :  { %195 = vst.msk [vmem:[#allocation2 + $0x10] sm:$0x1] %vm132_vm2, %v192_v54 }
 0x215   :  { %v338_v59 = vpop.permute.xlu0 %337 }
 0x216   :  { %347 = vst.msk [vmem:[#allocation2] sm:$0xff] %vm346_vm3, %v338_v59 }
 0x21b   :  { %v340_v25 = vpop.permute.xlu1 %339 }
 0x21c   :  { %348 = vst.msk [vmem:[#allocation2 + $0x8] sm:$0xff] %vm346_vm3, %v340_v25 }
 0x21f   :  { %v342_v61 = vpop.permute.xlu1 %341 }
 0x220   :  { %350 = vst.msk [vmem:[#allocation2 + $0x10] sm:$0x1] %vm349_vm4, %v342_v61 }
 0x221   :  { %570 = shalt.err (!%p567_p4)
}
 0x222   :  { %s571_s23 = scalar_lea.hbm %s781_s5, 384 }
 0x223   :  { %p572_p5 = scmp.ne.s32.totalorder %s781_s5, %s571_s23  ;;  %p575_p6 = scmp.lt.u32.totalorder %s571_s23, %s781_s5 }
 0x225   :  { %p577_p7 = pnand %p575_p6, %p572_p5 }
 0x227   :  { %580 = shalt.err (!%p577_p7)
}
 0x228   :  { %s588_s28 = smov 128   ;;  %s589_s1 = smov 8  }
 0x229   :  { %362 = dma.vmem_to_hbm [thread:$0]  %s357_s19, 384, %s781_s5, [#allocation3], %s588_s28, %s588_s28, %s589_s1  }
 0x22a   :  { %581 = dma.done.wait [#allocation3], 384  }
 0x22b   :  { %582 = vsyncadd [#allocation3], 4294966912 }
 0x22c   :  { %366 = vsyncpa [#allocation3], 1 }

</bundles_post_ra>
